<compile_context>
chip_gen: v6e
topology: v6e:2x2x1
jax: 0.10.0
libtpu: 0.0.40
codegen_flags: <defaults>
</compile_context>

<pallas_src>
import jax
import jax.numpy as jnp
from jax.experimental import pallas as pl
from jax.experimental.pallas import tpu as pltpu


# ---------------------------------------------------------------------------
# Kernels
# ---------------------------------------------------------------------------
def _mlp_scores(x, w1, b1, w2_row, b2):
    """sigmoid(x @ W1 + b1) . w2 + b2 for one row tile -> (rows, 1) f32."""
    # Layer 1 on the MXU (f32 accumulation), bias add (VPU) + sigmoid (EUP).
    h = jnp.dot(x, w1, preferred_element_type=jnp.float32)
    h = jax.nn.sigmoid(h + b1)
    # Layer 2 (H -> 1) on the VPU (broadcast multiply) + XLU lane reduce; a
    # 1-column MXU matmul would waste the MXU tile and add an MRF-drain dep.
    return jnp.sum(h * w2_row, axis=-1, keepdims=True) + b2


def _listnet_kernel_lane_dense(x_ref, w1_ref, b1_ref, w2_ref, b2_ref, o_ref):
    rows = x_ref.shape[0]
    groups = rows // 128
    scores = _mlp_scores(x_ref[...], w1_ref[...], b1_ref[...],
                         w2_ref[...], b2_ref[0, 0])                  # (rows, 1)
    # Sublane -> lane relayout so the store is lane-dense (groups, 128):
    # broadcast each row's score across 128 lanes, keep only the lane equal to
    # the row's position inside its 128-row group, then reduce over the
    # sublane axis.  Pure VPU/XLU work that hides under the MXU-bound layer 1.
    # TODO(synk): switch to a direct (rows,1)->(1,rows) XLU transpose once
    # relayout of degenerate minor dims is guaranteed on all toolchains.
    bcast = jnp.broadcast_to(scores, (rows, 128)).reshape(groups, 128, 128)
    sub = jax.lax.broadcasted_iota(jnp.int32, (128, 128), 0)
    lane = jax.lax.broadcasted_iota(jnp.int32, (128, 128), 1)
    diag = (sub == lane).astype(jnp.float32)[None, :, :]
    o_ref[...] = jnp.sum(bcast * diag, axis=1).astype(o_ref.dtype)   # (groups, 128)


def _listnet_kernel_column(x_ref, w1_ref, b1_ref, w2_ref, b2_ref, o_ref):
    scores = _mlp_scores(x_ref[...], w1_ref[...], b1_ref[...],
                         w2_ref[...], b2_ref[0, 0])
    o_ref[...] = scores.astype(o_ref.dtype)                          # (rows, 1)


# ---------------------------------------------------------------------------
# Tiling / VMEM accounting helpers (lane/sublane-padded shapes)
# ---------------------------------------------------------------------------
def _round_up(v, m):
    return ((v + m - 1) // m) * m


def _sublane(dtype):
    return {1: 32, 2: 16}.get(jnp.dtype(dtype).itemsize, 8)


def _padded_bytes(rows, cols, dtype):
    dt = jnp.dtype(dtype)
    return (_round_up(max(rows, 1), _sublane(dt))
            * _round_up(max(cols, 1), 128) * dt.itemsize)


def _vmem_budget_bytes():
    cap = 0
    try:
        cap = int(pltpu.get_tpu_info().vmem_capacity_bytes)
    except Exception:
        cap = 0
    if cap <= 0:
        cap = 64 << 20          # conservative fallback: v7x per-TensorCore VMEM
    return max(min(cap // 2, 48 << 20), 12 << 20)


def _vmem_estimate(row_tile, x_dtype, out_dtype, f, h, lane_dense):
    x_buf = _padded_bytes(row_tile, f, x_dtype)          # F pads to 128 lanes
    if lane_dense:
        out_buf = _padded_bytes(row_tile // 128, 128, out_dtype)
        interm = 2 * _padded_bytes(row_tile, 128, jnp.float32)   # h + relayout temp
    else:
        out_buf = _padded_bytes(row_tile, 1, out_dtype)          # 1 -> 128 lane pad
        interm = _padded_bytes(row_tile, 128, jnp.float32)       # h
    weights = _padded_bytes(f, h, x_dtype) + 2 * _padded_bytes(1, h, jnp.float32)
    return 2 * (x_buf + out_buf) + 2 * weights + interm + (2 << 20)


def _choose_tiling(n_rows, x_dtype, out_dtype, f, h, budget, cap_rows=16384):
    """Returns (mode, row_tile); mode is 'lane_dense' or 'column'."""
    def fits(rt, lane_dense):
        return _vmem_estimate(rt, x_dtype, out_dtype, f, h, lane_dense) <= budget

    if n_rows % 128 == 0:
        # Keeps the (row_tile//128, 128) out block sublane-tileable.
        gran = 128 * _sublane(out_dtype)
        cap = min(n_rows, cap_rows)
        for min_steps in (4, 2):            # >= 4: both v7x cores still pipeline
            best = 0
            t = gran
            while t <= cap:
                if n_rows % t == 0 and n_rows // t >= min_steps and fits(t, True):
                    best = t
                t += gran
            if best:
                return "lane_dense", best
        if fits(n_rows, True):
            return "lane_dense", n_rows     # single block covers all rows
    # Column fallback: small or ragged N.
    sub = _sublane(x_dtype)
    cap = min(n_rows, cap_rows)
    for min_steps in (4, 2):
        best = 0
        t = sub
        while t <= cap:
            if n_rows % t == 0 and n_rows // t >= min_steps and fits(t, False):
                best = t
            t += sub
        if best:
            return "column", best
    return "column", n_rows


# ---------------------------------------------------------------------------
# Wrapper
# ---------------------------------------------------------------------------
def listnet_forward(x, w1, b1, w2, b2, *, row_tile=None):
    """ListNet forward: sigmoid(x @ W1 + b1) @ W2 + b2  ->  (N, 1) scores."""
    N, F = x.shape
    H = w1.shape[1]
    assert w1.shape == (F, H)
    out_dtype = x.dtype

    # Tiny parameters: cast/reshape in the wrapper (negligible traffic).  x is
    # consumed in the caller's dtype — no wrapper-side bf16 cast of x.
    w1 = jnp.asarray(w1).astype(x.dtype)
    b1 = jnp.asarray(b1, jnp.float32).reshape(1, H)
    w2_row = jnp.asarray(w2, jnp.float32).reshape(1, H)
    b2 = jnp.asarray(b2, jnp.float32).reshape(1, 1)

    budget = _vmem_budget_bytes()
    if row_tile is None:
        mode, row_tile = _choose_tiling(N, x.dtype, out_dtype, F, H, budget)
    else:
        assert N % row_tile == 0, "row_tile must divide N"
        gran = 128 * _sublane(out_dtype)
        if N % 128 == 0 and (row_tile % gran == 0 or row_tile == N):
            mode = "lane_dense"
        else:
            assert row_tile == N or row_tile % _sublane(x.dtype) == 0
            mode = "column"

    grid = (N // row_tile,)
    lane_dense = (mode == "lane_dense")
    vmem_est = _vmem_estimate(row_tile, x.dtype, out_dtype, F, H, lane_dense)
    vmem_limit = int(min(max(int(vmem_est * 1.2), 8 << 20), 48 << 20))

    cost = pl.CostEstimate(
        flops=2 * N * F * H + 2 * N * H,
        transcendentals=N * H,
        bytes_accessed=(N * F * jnp.dtype(x.dtype).itemsize
                        + N * jnp.dtype(out_dtype).itemsize
                        + F * H * jnp.dtype(x.dtype).itemsize
                        + (2 * H + 1) * 4),
    )

    in_specs = [
        pl.BlockSpec((row_tile, F), lambda i: (i, 0)),      # x row tile (pipelined)
        # Weights/biases: constant block index -> DMA'd once, resident in VMEM.
        pl.BlockSpec((F, H), lambda i: (0, 0)),             # W1
        pl.BlockSpec((1, H), lambda i: (0, 0)),             # b1
        pl.BlockSpec((1, H), lambda i: (0, 0)),             # w2 row
        pl.BlockSpec(memory_space=pltpu.MemorySpace.SMEM),  # b2 scalar
    ]
    compiler_params = pltpu.CompilerParams(
        dimension_semantics=("parallel",),      # megacore-shards row tiles on v7x
        vmem_limit_bytes=vmem_limit,
    )

    if lane_dense:
        out = pl.pallas_call(
            _listnet_kernel_lane_dense,
            out_shape=jax.ShapeDtypeStruct((N // 128, 128), out_dtype),
            grid_spec=pltpu.PrefetchScalarGridSpec(
                num_scalar_prefetch=0,
                grid=grid,
                in_specs=in_specs,
                out_specs=pl.BlockSpec((row_tile // 128, 128), lambda i: (i, 0)),
            ),
            compiler_params=compiler_params,
            cost_estimate=cost,
        )(x, w1, b1, w2_row, b2)
        return out.reshape(N, 1)

    out = pl.pallas_call(
        _listnet_kernel_column,
        out_shape=jax.ShapeDtypeStruct((N, 1), out_dtype),
        grid_spec=pltpu.PrefetchScalarGridSpec(
            num_scalar_prefetch=0,
            grid=grid,
            in_specs=in_specs,
            out_specs=pl.BlockSpec((row_tile, 1), lambda i: (i, 0)),
        ),
        compiler_params=compiler_params,
        cost_estimate=cost,
    )(x, w1, b1, w2_row, b2)
    return out


def listnet_reference(x, w1, b1, w2, b2):
    h = jax.nn.sigmoid(x @ w1 + b1)
    return h @ w2 + b2


if __name__ == "__main__":
    F, H = 16, 32
    key = jax.random.PRNGKey(0)
    kx, kw1, kb1, kw2, kb2, kx2 = jax.random.split(key, 6)

    # Deterministic parameter init (uniform, like nn.Linear's default scale).
    bound1 = 1.0 / (F ** 0.5)
    bound2 = 1.0 / (H ** 0.5)
    w1 = jax.random.uniform(kw1, (F, H), minval=-bound1, maxval=bound1, dtype=jnp.float32)
    b1 = jax.random.uniform(kb1, (1, H), minval=-bound1, maxval=bound1, dtype=jnp.float32)
    w2 = jax.random.uniform(kw2, (H, 1), minval=-bound2, maxval=bound2, dtype=jnp.float32)
    b2 = jax.random.uniform(kb2, (1, 1), minval=-bound2, maxval=bound2, dtype=jnp.float32)

    # --- Small N (module-scale shapes): column-output fallback path. ---
    N = 8
    x = jax.random.normal(kx, (N, F), dtype=jnp.float32)
    ref = listnet_reference(x, w1, b1, w2, b2)
    out = jax.block_until_ready(listnet_forward(x, w1, b1, w2, b2))
    assert out.shape == (N, 1)
    assert jnp.allclose(out, ref, atol=2e-5, rtol=2e-5)

    # --- Larger N: lane-dense output blocks, multiple pipelined grid steps. ---
    N2 = 4096
    x2 = jax.random.normal(kx2, (N2, F), dtype=jnp.float32)
    ref2 = listnet_reference(x2, w1, b1, w2, b2)
    out2 = jax.block_until_ready(listnet_forward(x2, w1, b1, w2, b2))
    assert out2.shape == (N2, 1)
    assert jnp.allclose(out2, ref2, atol=1e-4, rtol=1e-4)

    # --- bf16 x provided by the caller (no wrapper-side cast inside the op). ---
    x2_bf = x2.astype(jnp.bfloat16)   # stands in for an upstream bf16 producer
    ref_bf = listnet_reference(x2_bf.astype(jnp.float32), w1, b1, w2, b2)
    out_bf = jax.block_until_ready(listnet_forward(x2_bf, w1, b1, w2, b2))
    assert out_bf.shape == (N2, 1) and out_bf.dtype == jnp.bfloat16
    assert jnp.allclose(out_bf.astype(jnp.float32), ref_bf, atol=2e-2, rtol=2e-2)

    print("KERNEL_OK")
</pallas_src>

<mosaic_0001>
module attributes {stable_mosaic.version = 11 : i64} {
  func.func @_listnet_kernel_column(%arg0: i32, %arg1: memref<8x16xf32, #tpu.memory_space<vmem>>, %arg2: memref<16x32xf32, #tpu.memory_space<vmem>>, %arg3: memref<1x32xf32, #tpu.memory_space<vmem>>, %arg4: memref<1x32xf32, #tpu.memory_space<vmem>>, %arg5: memref<1x1xf32, #tpu.memory_space<smem>>, %arg6: memref<8x1xf32, #tpu.memory_space<vmem>>) attributes {dimension_semantics = [#tpu.dimension_semantics<parallel>], iteration_bounds = array<i64: 1>, scalar_prefetch = 0 : i64, scratch_operands = 0 : i64, tpu.core_type = #tpu.core_type<tc>, window_params = [{transform_indices = @transform_0, window_bounds = array<i64: 8, 16>}, {pipeline_mode = #tpu.pipeline_mode<synchronous>, transform_indices = @transform_1, window_bounds = array<i64: 16, 32>}, {pipeline_mode = #tpu.pipeline_mode<synchronous>, transform_indices = @transform_2, window_bounds = array<i64: 1, 32>}, {pipeline_mode = #tpu.pipeline_mode<synchronous>, transform_indices = @transform_3, window_bounds = array<i64: 1, 32>}, {transform_indices = @transform_4, window_bounds = array<i64: 1, 1>}, {transform_indices = @transform_5, window_bounds = array<i64: 8, 1>}]} {
    %c0 = arith.constant 0 : index
    %c0_0 = arith.constant 0 : index
    %0 = vector.load %arg1[%c0, %c0_0] : memref<8x16xf32, #tpu.memory_space<vmem>>, vector<8x16xf32>
    %c0_1 = arith.constant 0 : index
    %c0_2 = arith.constant 0 : index
    %1 = vector.load %arg2[%c0_1, %c0_2] : memref<16x32xf32, #tpu.memory_space<vmem>>, vector<16x32xf32>
    %c0_3 = arith.constant 0 : index
    %c0_4 = arith.constant 0 : index
    %2 = vector.load %arg3[%c0_3, %c0_4] : memref<1x32xf32, #tpu.memory_space<vmem>>, vector<1x32xf32>
    %c0_5 = arith.constant 0 : index
    %c0_6 = arith.constant 0 : index
    %3 = vector.load %arg4[%c0_5, %c0_6] : memref<1x32xf32, #tpu.memory_space<vmem>>, vector<1x32xf32>
    %c0_7 = arith.constant 0 : index
    %c0_8 = arith.constant 0 : index
    %4 = memref.load %arg5[%c0_7, %c0_8] : memref<1x1xf32, #tpu.memory_space<smem>>
    %cst = arith.constant dense<0.000000e+00> : vector<8x32xf32>
    %5 = tpu.matmul %0, %1, %cst {dimension_numbers = #tpu.dot_dimension_numbers<[1], [0], [0], [1], [0, 0, 1, 1], [], []>} : vector<8x16xf32>, vector<16x32xf32>, vector<8x32xf32> -> vector<8x32xf32>
    %6 = vector.broadcast %2 : vector<1x32xf32> to vector<8x32xf32>
    %7 = arith.addf %5, %6 : vector<8x32xf32>
    %8 = arith.negf %7 : vector<8x32xf32>
    %9 = math.exp %8 : vector<8x32xf32>
    %cst_9 = arith.constant 1.000000e+00 : f32
    %10 = vector.broadcast %cst_9 : f32 to vector<8x32xf32>
    %11 = arith.addf %10, %9 : vector<8x32xf32>
    %12 = arith.divf %10, %11 : vector<8x32xf32>
    %13 = vector.broadcast %3 : vector<1x32xf32> to vector<8x32xf32>
    %14 = arith.mulf %12, %13 : vector<8x32xf32>
    %cst_10 = arith.constant dense<0.000000e+00> : vector<8xf32>
    %15 = vector.multi_reduction <add>, %14, %cst_10 [1] : vector<8x32xf32> to vector<8xf32>
    %16 = vector.shape_cast %15 : vector<8xf32> to vector<8x1xf32>
    %17 = vector.broadcast %4 : f32 to vector<8x1xf32>
    %18 = arith.addf %16, %17 : vector<8x1xf32>
    %c0_11 = arith.constant 0 : index
    %c0_12 = arith.constant 0 : index
    %19 = vector.load %arg6[%c0_11, %c0_12] : memref<8x1xf32, #tpu.memory_space<vmem>>, vector<8x1xf32>
    tpu.vector_store %arg6[%c0_11, %c0_12], %18 {strides = array<i32>} : memref<8x1xf32, #tpu.memory_space<vmem>>, vector<8x1xf32>,
    return
  }
  func.func @transform_0(%arg0: i32) -> (i32, i32) {
    %c0_i32 = arith.constant 0 : i32
    %c0_i32_0 = arith.constant 0 : i32
    return %arg0, %c0_i32 : i32, i32
  }
  func.func @transform_1(%arg0: i32) -> (i32, i32) {
    %c0_i32 = arith.constant 0 : i32
    %c0_i32_0 = arith.constant 0 : i32
    %c0_i32_1 = arith.constant 0 : i32
    return %c0_i32, %c0_i32_0 : i32, i32
  }
  func.func @transform_2(%arg0: i32) -> (i32, i32) {
    %c0_i32 = arith.constant 0 : i32
    %c0_i32_0 = arith.constant 0 : i32
    %c0_i32_1 = arith.constant 0 : i32
    return %c0_i32, %c0_i32_0 : i32, i32
  }
  func.func @transform_3(%arg0: i32) -> (i32, i32) {
    %c0_i32 = arith.constant 0 : i32
    %c0_i32_0 = arith.constant 0 : i32
    %c0_i32_1 = arith.constant 0 : i32
    return %c0_i32, %c0_i32_0 : i32, i32
  }
  func.func @transform_4(%arg0: i32) -> (i32, i32) {
    %c0_i32 = arith.constant 0 : i32
    %c0_i32_0 = arith.constant 0 : i32
    %c0_i32_1 = arith.constant 0 : i32
    return %c0_i32, %c0_i32_0 : i32, i32
  }
  func.func @transform_5(%arg0: i32) -> (i32, i32) {
    %c0_i32 = arith.constant 0 : i32
    %c0_i32_0 = arith.constant 0 : i32
    return %arg0, %c0_i32 : i32, i32
  }
}

</mosaic_0001>

<bundles_post_ra>
// kernel: tpu_custom_call.1
= control target key start
LH: loop header
LB: loop body
LE: loop exit
PB: predicated region body
PF: predicated region fallthrough
CT: control target
= control target key end

     0   :  { %11 = vsyncpa [#allocation4], 0  ;;  %s282_s0 = inlined_call_operand.hbm [shape: f32[8,16], index: 0, kind: input, shape index: {}]   ;;  %s283_s1 = inlined_call_operand.hbm [shape: f32[16,32], index: 1, kind: input, shape index: {}]   ;;  %s284_s2 = inlined_call_operand.vmem [shape: f32[1,32], index: 2, kind: input, shape index: {}]   ;;  %s285_s3 = inlined_call_operand.vmem [shape: f32[1,32], index: 3, kind: input, shape index: {}]   ;;  %s286_s4 = inlined_call_operand.<no memory space> [shape: f32[1,1], index: 4, kind: input, shape index: {}]   ;;  %s287_s5 = inlined_call_operand.vmem [shape: f32[8,1], index: 5, kind: output, shape index: {}]  }
   0x1   :  { %12 = vsyncpa [#allocation6], 0  ;;  %s228_s18 = smov [#allocation3]   ;;  %s229_s20 = smov [#allocation5]  }
   0x2   :  { %s19_s19 = sshll.u32 %s228_s18, 4  ;;  %s28_s21 = sshll.u32 %s229_s20, 4  ;;  %s20_s19 = int_to_ptr.vmem [resolvable:$true] %s19_s19  ;;  %s29_s21 = int_to_ptr.vmem [resolvable:$true] %s28_s21 }
   0x3   :  { %s192_s22 = scalar_lea.vmem %s20_s19, 128  ;;  %p197_p1 = scmp.lt.s32.totalorder %s20_s19, %s20_s19 }
   0x4   :  { %p193_p0 = scmp.ne.s32.totalorder %s20_s19, %s192_s22  ;;  %p198_p2 = scmp.lt.s32.totalorder %s192_s22, %s192_s22 }
   0x6   :  { %p199_p3 = por %p198_p2, %p197_p1 }
   0x8   :  { %p200_p4 = pnand %p199_p3, %p193_p0 }
   0xa   :  { %203 = shalt.err (!%p200_p4)
}
   0xb   :  { %22 = dma.hbm_to_vmem [thread:$0]  %s282_s0, 128, %s20_s19, [#allocation4]  }
   0xc   :  { %s212_s25 = scalar_lea.vmem %s29_s21, 256  ;;  %p217_p6 = scmp.lt.s32.totalorder %s29_s21, %s29_s21 }
   0xd   :  { %p213_p5 = scmp.ne.s32.totalorder %s29_s21, %s212_s25  ;;  %p218_p7 = scmp.lt.s32.totalorder %s212_s25, %s212_s25 }
   0xf   :  { %p219_p8 = por %p218_p7, %p217_p6 }
  0x11   :  { %p220_p9 = pnand %p219_p8, %p213_p5 }
  0x13   :  { %223 = shalt.err (!%p220_p9)
}
  0x14   :  { %s230_s26 = smov 128   ;;  %s231_s27 = smov 8  }
  0x15   :  { %34 = dma.hbm_to_vmem [thread:$0]  %s283_s1, 256, %s29_s21, [#allocation6], %s230_s26, %s230_s26, %s231_s27  }
  0x16   :  { %224 = dma.done.wait [#allocation4], 128  }
  0x17   :  { %225 = vsyncadd [#allocation4], 4294967168 }
  0x18   :  { %226 = dma.done.wait [#allocation6], 256  }
  0x19   :  { %227 = vsyncadd [#allocation6], 4294967040  ;;  %v232_v0 = vmov 0.0   ;;  %vm233_vm0 = vmmov 0   ;;  %v49_v1 = vld [vmem:[#allocation5 + $0x8] sm:$0xff]  ;;  %v48_v2 = vld [vmem:[#allocation5] sm:$0xff]  ;;  %v150_v15 = vstv %s286_s4 }
  0x1a   :  { %167 = vmatprep.subr.mxu0 %v232_v0  ;;  %171 = vmatprep.mubr.msk.f32.mxu0 %vm233_vm0, %v232_v0  ;;  %v47_v3 = vld [vmem:[#allocation3] sm:$0xff]  ;;  %vm59_vm1 = vcmask 130048   ;;  %vm146_vm2 = vcmask 261120   ;;  %vm152_vm3 = vcmask 7168  }
  0x1b   :  { %168 = vmatpush3.msra.mxu0 %v49_v1  ;;  %v160_v4 = vld [vmem:[%s284_s2] ss:$0 sm:$0xff] }
  0x1c   :  { %169 = vmatprep.subr.mxu0 %v232_v0  ;;  %v163_v11 = vld [vmem:[%s285_s3] ss:$0 sm:$0xff] }
  0x1d   :  { %170 = vmatpush3.msra.mxu0 %v48_v2 }
  0x1e   :  { %172 = vmatmul.mubr.msk.f32.vlgmr.msra.gmra.mxu0 %vm59_vm1, %v47_v3 }
  0xde   :  { %v129_v5 = vpop.f32.mrf.mxu0 }
  0xdf   :  { %v130_v6 = vadd.f32 %v160_v4, %v129_v5 }
  0xe0   :  { %v173_v7 = vpop.f32.mrf.mxu0 }
  0xe1   :  { %v162_v8 = vmul.f32 -1.442695, %v130_v6 }
  0xe3   :  { %180 = vpow2.f32 %v162_v8 }
  0xf0   :  { %v181_v9 = vpop.eup %180 }
  0xf1   :  { %v136_v10 = vadd.f32 1.0, %v181_v9 }
  0xf3   :  { %182 = vrcp.f32 %v136_v10 }
 0x100   :  { %v183_v12 = vpop.eup %182 }
 0x101   :  { %v145_v13 = vmul.f32 %v183_v12, %v163_v11 }
 0x103   :  { %v147_v14 = vsel %vm146_vm2, %v145_v13, 0.0 }
 0x104   :  { %148 = vadd.xlane.f32.xlu0 %v147_v14 }
 0x18d   :  { %v149_v16 = vpop.xlane.xlu0 %148 }
 0x18e   :  { %v151_v17 = vadd.f32 %v150_v15, %v149_v16 }
 0x190   :  { %153 = vst.msk [vmem:[%s287_s5] sm:$0xff] %vm152_vm3, %v151_v17 }
 0x191   :  { %158 = vsyncpa [#allocation4], 1 }
 0x192   :  { %159 = vsyncpa [#allocation6], 1 }

</bundles_post_ra>
